<compile_context>
chip_gen: v7x
topology: tpu7x:2x2x1
jax: 0.10.0
libtpu: 0.0.40
codegen_flags: <defaults>
</compile_context>

<pallas_src>
import functools

import jax
import jax.numpy as jnp
from jax import lax
from jax.experimental import pallas as pl
from jax.experimental.pallas import tpu as pltpu


def _sublayer_connection_kernel(seed_ref,          # SMEM scalar prefetch: (1,) int32
                                x_ref,             # (tm, H) input rows
                                params_ref,        # (3, H) f32: [gamma; beta; bias]
                                w_ref,             # (H, H) bf16 sublayer weight
                                o_ref,             # (tm, H) output rows
                                *, dropout_p, eps, tm):
    # ---- LayerNorm(x) over the hidden axis (stats accumulated in f32) ----
    x_raw = x_ref[...]                              # keep input dtype for residual
    xf = x_raw.astype(jnp.float32)
    mean = jnp.mean(xf, axis=-1, keepdims=True)
    xc = xf - mean
    var = jnp.mean(xc * xc, axis=-1, keepdims=True)
    xn = xc * lax.rsqrt(var + eps)                  # rsqrt rides the EUP slot

    params = params_ref[...].astype(jnp.float32)    # single load of the packed slab
    gamma = params[0:1, :]
    beta = params[1:2, :]
    bias = params[2:3, :]
    xn = xn * gamma + beta

    # ---- sublayer: Linear(H -> H), bf16 operands on the MXU, f32 accumulation ----
    y = jnp.dot(xn.astype(jnp.bfloat16), w_ref[...],
                preferred_element_type=jnp.float32)
    y = y + bias

    # ---- dropout (inverted scaling) ----
    # Counter-based hash PRNG in plain uint32 VPU ops (portable: lowers on TPU
    # and in interpret mode, no pltpu.prng_* needed). The mask depends only on
    # (seed, global row, col), so it is invariant to the row tiling.
    if dropout_p >= 1.0:
        y = jnp.zeros_like(y)
    elif dropout_p > 0.0:
        shape = y.shape
        seed_u = seed_ref[0].astype(jnp.uint32)
        row_off = (pl.program_id(0) * tm).astype(jnp.uint32)
        rows_u = lax.broadcasted_iota(jnp.uint32, shape, 0) + row_off
        cols_u = lax.broadcasted_iota(jnp.uint32, shape, 1)
        h = (rows_u * jnp.uint32(0x9E3779B1)) ^ (cols_u * jnp.uint32(0x85EBCA77)) ^ seed_u
        h = h ^ (h >> jnp.uint32(16))
        h = h * jnp.uint32(0x7FEB352D)
        h = h ^ (h >> jnp.uint32(15))
        h = h * jnp.uint32(0x846CA68B)
        h = h ^ (h >> jnp.uint32(16))
        threshold = jnp.uint32(min(int(round(dropout_p * (2 ** 32))), 2 ** 32 - 1))
        scale = jnp.float32(1.0 / (1.0 - dropout_p))
        # single fused select (keep -> scale, drop -> 0) then one multiply
        y = y * jnp.where(h >= threshold, scale, jnp.float32(0.0))

    # ---- residual add in the input dtype ----
    o_ref[...] = (x_raw + y.astype(x_raw.dtype)).astype(o_ref.dtype)


def sublayer_connection(x, gamma, beta, w, b, *, dropout_p=0.1, eps=1e-5, seed=0,
                        block_rows=512, vmem_limit_bytes=None):
    """x: [B, S, H]. Returns x + dropout(Linear(LayerNorm(x)))."""
    B, S, H = x.shape
    rows = B * S
    x2 = x.reshape(rows, H)

    # Row tile: big enough that BlockSpec auto-pipelining hides the x/out DMAs.
    # Multiple of 8 (sublane) when it is not the full row extent.
    tm = min(block_rows, rows)
    if tm < rows:
        tm = max(8, (tm // 8) * 8)
    grid = (pl.cdiv(rows, tm),)

    # Pack LayerNorm affine params and the Linear bias into one (3, H) slab:
    # one DMA / one double-buffer instead of three (1, H) transfers per step.
    params = jnp.stack([gamma, beta, b], axis=0).astype(jnp.float32)

    # bf16 weight: MXU-native on v6e/v7x, halves weight DMA bytes and VMEM.
    w_bf16 = w.astype(jnp.bfloat16)

    seed_arr = jnp.array([seed], dtype=jnp.int32)

    kernel = functools.partial(_sublayer_connection_kernel,
                               dropout_p=float(dropout_p), eps=float(eps), tm=tm)

    compiler_params = pltpu.CompilerParams(
        # Independent row tiles -> megacore sharding on v7x; harmless on v5e/v6e.
        dimension_semantics=("parallel",),
        # For large H (>= 2048) raise this so the resident bf16 weight block and
        # 512-row x tiles fit the scoped VMEM budget (v6e/v7x defaults: 32 MiB).
        vmem_limit_bytes=vmem_limit_bytes,
    )

    out2 = pl.pallas_call(
        kernel,
        out_shape=jax.ShapeDtypeStruct((rows, H), x.dtype),
        grid_spec=pltpu.PrefetchScalarGridSpec(
            num_scalar_prefetch=1,
            grid=grid,
            in_specs=[
                pl.BlockSpec((tm, H), lambda i, seed: (i, 0)),   # x row tile
                pl.BlockSpec((3, H), lambda i, seed: (0, 0)),    # gamma/beta/bias slab
                pl.BlockSpec((H, H), lambda i, seed: (0, 0)),    # W (bf16, resident)
            ],
            out_specs=pl.BlockSpec((tm, H), lambda i, seed: (i, 0)),
        ),
        compiler_params=compiler_params,
    )(seed_arr, x2, params, w_bf16)

    return out2.reshape(B, S, H)


if __name__ == "__main__":
    key = jax.random.PRNGKey(0)
    kx, kw = jax.random.split(key)

    batch, seq, hidden = 2, 8, 128
    x = jax.random.normal(kx, (batch, seq, hidden), dtype=jnp.float32)

    # LayerNorm params as in PyTorch default init; Linear sublayer weights.
    gamma = jnp.ones((hidden,), dtype=jnp.float32)
    beta = jnp.zeros((hidden,), dtype=jnp.float32)
    w = jax.random.normal(kw, (hidden, hidden), dtype=jnp.float32) * 0.02
    b = jnp.zeros((hidden,), dtype=jnp.float32)

    out = sublayer_connection(x, gamma, beta, w, b, dropout_p=0.1, seed=0)
    jax.block_until_ready(out)
    assert out.shape == (batch, seq, hidden)
    assert bool(jnp.all(jnp.isfinite(out)))
    print("KERNEL_OK")
</pallas_src>

<mosaic_0001>
module attributes {stable_mosaic.version = 11 : i64} {
  func.func @_sublayer_connection_kernel(%arg0: i32, %arg1: memref<1xi32, #tpu.memory_space<smem>>, %arg2: memref<16x128xf32, #tpu.memory_space<vmem>>, %arg3: memref<3x128xf32, #tpu.memory_space<vmem>>, %arg4: memref<128x128xbf16, #tpu.memory_space<vmem>>, %arg5: memref<16x128xf32, #tpu.memory_space<vmem>>) attributes {dimension_semantics = [#tpu.dimension_semantics<parallel>], iteration_bounds = array<i64: 1>, scalar_prefetch = 1 : i64, scratch_operands = 0 : i64, tpu.core_type = #tpu.core_type<tc>, window_params = [{transform_indices = @transform_0, window_bounds = array<i64: 16, 128>}, {pipeline_mode = #tpu.pipeline_mode<synchronous>, transform_indices = @transform_1, window_bounds = array<i64: 3, 128>}, {pipeline_mode = #tpu.pipeline_mode<synchronous>, transform_indices = @transform_2, window_bounds = array<i64: 128, 128>}, {transform_indices = @transform_3, window_bounds = array<i64: 16, 128>}]} {
    %c0 = arith.constant 0 : index
    %c0_0 = arith.constant 0 : index
    %0 = vector.load %arg2[%c0, %c0_0] : memref<16x128xf32, #tpu.memory_space<vmem>>, vector<16x128xf32>
    %cst = arith.constant dense<0.000000e+00> : vector<16xf32>
    %1 = vector.multi_reduction <add>, %0, %cst [1] : vector<16x128xf32> to vector<16xf32>
    %2 = vector.shape_cast %1 : vector<16xf32> to vector<16x1xf32>
    %cst_1 = arith.constant 1.280000e+02 : f32
    %3 = vector.broadcast %cst_1 : f32 to vector<16x1xf32>
    %4 = arith.divf %2, %3 : vector<16x1xf32>
    %5 = vector.broadcast %4 : vector<16x1xf32> to vector<16x128xf32>
    %6 = arith.subf %0, %5 : vector<16x128xf32>
    %7 = arith.mulf %6, %6 : vector<16x128xf32>
    %cst_2 = arith.constant dense<0.000000e+00> : vector<16xf32>
    %8 = vector.multi_reduction <add>, %7, %cst_2 [1] : vector<16x128xf32> to vector<16xf32>
    %9 = vector.shape_cast %8 : vector<16xf32> to vector<16x1xf32>
    %cst_3 = arith.constant 1.280000e+02 : f32
    %10 = vector.broadcast %cst_3 : f32 to vector<16x1xf32>
    %11 = arith.divf %9, %10 : vector<16x1xf32>
    %cst_4 = arith.constant 9.99999974E-6 : f32
    %12 = vector.broadcast %cst_4 : f32 to vector<16x1xf32>
    %13 = arith.addf %11, %12 : vector<16x1xf32>
    %14 = math.rsqrt %13 : vector<16x1xf32>
    %15 = vector.broadcast %14 : vector<16x1xf32> to vector<16x128xf32>
    %16 = arith.mulf %6, %15 : vector<16x128xf32>
    %c0_5 = arith.constant 0 : index
    %c0_6 = arith.constant 0 : index
    %17 = vector.load %arg3[%c0_5, %c0_6] : memref<3x128xf32, #tpu.memory_space<vmem>>, vector<3x128xf32>
    %18 = vector.extract_strided_slice %17 {offsets = [0, 0], sizes = [1, 128], strides = [1, 1]} : vector<3x128xf32> to vector<1x128xf32>
    %19 = vector.extract_strided_slice %17 {offsets = [1, 0], sizes = [1, 128], strides = [1, 1]} : vector<3x128xf32> to vector<1x128xf32>
    %20 = vector.extract_strided_slice %17 {offsets = [2, 0], sizes = [1, 128], strides = [1, 1]} : vector<3x128xf32> to vector<1x128xf32>
    %21 = vector.broadcast %18 : vector<1x128xf32> to vector<16x128xf32>
    %22 = arith.mulf %16, %21 : vector<16x128xf32>
    %23 = vector.broadcast %19 : vector<1x128xf32> to vector<16x128xf32>
    %24 = arith.addf %22, %23 : vector<16x128xf32>
    %25 = arith.truncf %24 : vector<16x128xf32> to vector<16x128xbf16>
    %c0_7 = arith.constant 0 : index
    %c0_8 = arith.constant 0 : index
    %26 = vector.load %arg4[%c0_7, %c0_8] : memref<128x128xbf16, #tpu.memory_space<vmem>>, vector<128x128xbf16>
    %cst_9 = arith.constant dense<0.000000e+00> : vector<16x128xf32>
    %27 = tpu.matmul %25, %26, %cst_9 {dimension_numbers = #tpu.dot_dimension_numbers<[1], [0], [0], [1], [0, 0, 1, 1], [], []>} : vector<16x128xbf16>, vector<128x128xbf16>, vector<16x128xf32> -> vector<16x128xf32>
    %28 = vector.broadcast %20 : vector<1x128xf32> to vector<16x128xf32>
    %29 = arith.addf %27, %28 : vector<16x128xf32>
    %c0_10 = arith.constant 0 : index
    %30 = memref.load %arg1[%c0_10] : memref<1xi32, #tpu.memory_space<smem>>
    %c16_i32 = arith.constant 16 : i32
    %31 = arith.muli %arg0, %c16_i32 : i32
    %32 = tpu.iota {dimensions = array<i32: 0>} : vector<16x128xi32>
    %33 = vector.broadcast %31 : i32 to vector<16x128xi32>
    %34 = arith.addi %32, %33 : vector<16x128xi32>
    %35 = tpu.iota {dimensions = array<i32: 1>} : vector<16x128xi32>
    %c-1640531535_i32 = arith.constant -1640531535 : i32
    %36 = vector.broadcast %c-1640531535_i32 : i32 to vector<16x128xi32>
    %37 = arith.muli %34, %36 : vector<16x128xi32>
    %c-2048144777_i32 = arith.constant -2048144777 : i32
    %38 = vector.broadcast %c-2048144777_i32 : i32 to vector<16x128xi32>
    %39 = arith.muli %35, %38 : vector<16x128xi32>
    %40 = arith.xori %37, %39 : vector<16x128xi32>
    %41 = vector.broadcast %30 : i32 to vector<16x128xi32>
    %42 = arith.xori %40, %41 : vector<16x128xi32>
    %c16_i32_11 = arith.constant 16 : i32
    %43 = vector.broadcast %c16_i32_11 : i32 to vector<16x128xi32>
    %44 = arith.shrui %42, %43 : vector<16x128xi32>
    %45 = arith.xori %42, %44 : vector<16x128xi32>
    %c2146121005_i32 = arith.constant 2146121005 : i32
    %46 = vector.broadcast %c2146121005_i32 : i32 to vector<16x128xi32>
    %47 = arith.muli %45, %46 : vector<16x128xi32>
    %c15_i32 = arith.constant 15 : i32
    %48 = vector.broadcast %c15_i32 : i32 to vector<16x128xi32>
    %49 = arith.shrui %47, %48 : vector<16x128xi32>
    %50 = arith.xori %47, %49 : vector<16x128xi32>
    %c-2073254261_i32 = arith.constant -2073254261 : i32
    %51 = vector.broadcast %c-2073254261_i32 : i32 to vector<16x128xi32>
    %52 = arith.muli %50, %51 : vector<16x128xi32>
    %c16_i32_12 = arith.constant 16 : i32
    %53 = vector.broadcast %c16_i32_12 : i32 to vector<16x128xi32>
    %54 = arith.shrui %52, %53 : vector<16x128xi32>
    %55 = arith.xori %52, %54 : vector<16x128xi32>
    %c429496730_i32 = arith.constant 429496730 : i32
    %56 = vector.broadcast %c429496730_i32 : i32 to vector<16x128xi32>
    %57 = arith.cmpi uge, %55, %56 : vector<16x128xi32>
    %cst_13 = arith.constant 1.11111116 : f32
    %cst_14 = arith.constant 0.000000e+00 : f32
    %58 = vector.broadcast %cst_13 : f32 to vector<16x128xf32>
    %59 = vector.broadcast %cst_14 : f32 to vector<16x128xf32>
    %60 = arith.select %57, %58, %59 : vector<16x128xi1>, vector<16x128xf32>
    %61 = arith.mulf %29, %60 : vector<16x128xf32>
    %62 = arith.addf %0, %61 : vector<16x128xf32>
    %c0_15 = arith.constant 0 : index
    %c0_16 = arith.constant 0 : index
    %63 = vector.load %arg5[%c0_15, %c0_16] : memref<16x128xf32, #tpu.memory_space<vmem>>, vector<16x128xf32>
    tpu.vector_store %arg5[%c0_15, %c0_16], %62 {strides = array<i32>} : memref<16x128xf32, #tpu.memory_space<vmem>>, vector<16x128xf32>,
    return
  }
  func.func @transform_0(%arg0: i32, %arg1: memref<1xi32, #tpu.memory_space<smem>>) -> (i32, i32) {
    %c0_i32 = arith.constant 0 : i32
    %c0_i32_0 = arith.constant 0 : i32
    return %arg0, %c0_i32 : i32, i32
  }
  func.func @transform_1(%arg0: i32, %arg1: memref<1xi32, #tpu.memory_space<smem>>) -> (i32, i32) {
    %c0_i32 = arith.constant 0 : i32
    %c0_i32_0 = arith.constant 0 : i32
    %c0_i32_1 = arith.constant 0 : i32
    return %c0_i32, %c0_i32_0 : i32, i32
  }
  func.func @transform_2(%arg0: i32, %arg1: memref<1xi32, #tpu.memory_space<smem>>) -> (i32, i32) {
    %c0_i32 = arith.constant 0 : i32
    %c0_i32_0 = arith.constant 0 : i32
    %c0_i32_1 = arith.constant 0 : i32
    return %c0_i32, %c0_i32_0 : i32, i32
  }
  func.func @transform_3(%arg0: i32, %arg1: memref<1xi32, #tpu.memory_space<smem>>) -> (i32, i32) {
    %c0_i32 = arith.constant 0 : i32
    %c0_i32_0 = arith.constant 0 : i32
    return %arg0, %c0_i32 : i32, i32
  }
}

</mosaic_0001>

<bundles_post_ra>
// kernel: tpu_custom_call.1
= control target key start
LH: loop header
LB: loop body
LE: loop exit
PB: predicated region body
PF: predicated region fallthrough
CT: control target
= control target key end

     0   :  { %10 = vsyncpa [#allocation5], 0  ;;  %s489_s0 = inlined_call_operand.<no memory space> [shape: s32[1], index: 0, kind: input, shape index: {}]   ;;  %s490_s1 = inlined_call_operand.hbm [shape: f32[16,128], index: 1, kind: input, shape index: {}]   ;;  %s491_s2 = inlined_call_operand.vmem [shape: f32[3,128], index: 2, kind: input, shape index: {}]   ;;  %s492_s3 = inlined_call_operand.hbm [shape: bf16[128,128], index: 3, kind: input, shape index: {}]   ;;  %s493_s4 = inlined_call_operand.hbm [shape: f32[16,128], index: 4, kind: output, shape index: {}]  }
   0x1   :  { %11 = vsyncpa [#allocation8], 0 }
   0x2   :  { %12 = vsyncpa [#allocation6], 0  ;;  %s386_s15 = smov [#allocation4]   ;;  %s314_s19 = scalar_lea.hbm %s490_s1, 256 }
   0x3   :  { %s18_s16 = sshll.u32 %s386_s15, 4  ;;  %p315_p0 = scmp.ne.s32.totalorder %s490_s1, %s314_s19  ;;  %s19_s16 = int_to_ptr.vmem [resolvable:$true] %s18_s16 }
   0x4   :  { %p318_p1 = scmp.lt.u32.totalorder %s314_s19, %s490_s1 }
   0x6   :  { %p320_p2 = pnand %p318_p1, %p315_p0 }
   0x8   :  { %323 = shalt.err (!%p320_p2)
}
   0x9   :  { %s324_s24 = scalar_lea.vmem %s19_s16, 256  ;;  %p329_p4 = scmp.lt.s32.totalorder %s19_s16, %s19_s16 }
   0xa   :  { %p325_p3 = scmp.ne.s32.totalorder %s19_s16, %s324_s24  ;;  %p330_p5 = scmp.lt.s32.totalorder %s324_s24, %s324_s24 }
   0xc   :  { %p331_p6 = por %p330_p5, %p329_p4 }
   0xe   :  { %p332_p7 = pnand %p331_p6, %p325_p3 }
  0x10   :  { %335 = shalt.err (!%p332_p7)
}
  0x11   :  { %s387_s25 = smov 128   ;;  %s388_s26 = smov 8  }
  0x12   :  { %24 = dma.hbm_to_vmem [thread:$0]  %s490_s1, 256, %s19_s16, [#allocation5], %s387_s25, %s387_s25, %s388_s26  }
  0x13   :  { %s389_s29 = smov [#allocation7]   ;;  %s336_s7 = scalar_lea.hbm %s492_s3, 1024 }
  0x14   :  { %s32_s30 = sshll.u32 %s389_s29, 4  ;;  %p337_p8 = scmp.ne.s32.totalorder %s492_s3, %s336_s7  ;;  %s33_s30 = int_to_ptr.vmem [resolvable:$true] %s32_s30 }
  0x15   :  { %p340_p9 = scmp.lt.u32.totalorder %s336_s7, %s492_s3 }
  0x17   :  { %p342_p10 = pnand %p340_p9, %p337_p8 }
  0x19   :  { %345 = shalt.err (!%p342_p10)
}
  0x1a   :  { %s346_s12 = scalar_lea.vmem %s33_s30, 1024  ;;  %p351_p12 = scmp.lt.s32.totalorder %s33_s30, %s33_s30 }
  0x1b   :  { %p347_p11 = scmp.ne.s32.totalorder %s33_s30, %s346_s12  ;;  %p352_p13 = scmp.lt.s32.totalorder %s346_s12, %s346_s12 }
  0x1d   :  { %p353_p0 = por %p352_p13, %p351_p12 }
  0x1f   :  { %p354_p1 = pnand %p353_p0, %p347_p11 }
  0x21   :  { %357 = shalt.err (!%p354_p1)
}
  0x22   :  { %s390_s1 = smov 64   ;;  %s391_s13 = smov 4  }
  0x23   :  { %38 = dma.hbm_to_vmem [thread:$0]  %s492_s3, 1024, %s33_s30, [#allocation8], %s390_s1, %s390_s1, %s391_s13  }
  0x24   :  { %380 = dma.done.wait [#allocation5], 256  }
  0x25   :  { %381 = vsyncadd [#allocation5], 4294967040 }
  0x26   :  { %382 = dma.done.wait [#allocation8], 1024  }
  0x27   :  { %383 = vsyncadd [#allocation8], 4294966272  ;;  %v447_v0 = vld [vmem:[#allocation4] sm:$0xff]  ;;  %v449_v1 = vld [vmem:[#allocation4 + $0x8] sm:$0xff]  ;;  %v392_v3 = vmov 0.0   ;;  %vm393_vm0 = vmmov 0   ;;  %v72_v23 = vlaneseq  ;;  %v209_v47 = vstv %s489_s0 }
  0x28   :  { %48 = vadd.xlane.f32.xlu0 %v447_v0  ;;  %v302_v2 = vld [vmem:[#allocation7] sm:$0xff]   ;;  %273 = vmatprep.subr.bf16.mxu0 %v392_v3  ;;  %v303_v12 = vld [vmem:[#allocation7 + $0x8] sm:$0xff]   ;;  %v304_v13 = vld [vmem:[#allocation7 + $0x10] sm:$0xff]   ;;  %s394_s0 = smov [#allocation9]  }
  0x29   :  { %274 = vmatpush3.bf16.msra.mxu0 %v302_v2  ;;  %v305_v14 = vld [vmem:[#allocation7 + $0x18] sm:$0xff]   ;;  %v306_v15 = vld [vmem:[#allocation7 + $0x20] sm:$0xff]   ;;  %289 = vmatprep.mubr.msk.bf16.mxu0 %vm393_vm0, %v392_v3  ;;  %v307_v16 = vld [vmem:[#allocation7 + $0x28] sm:$0xff]   ;;  %v73_v26 = vshrl.u32 %v72_v23, 7  ;;  %v203_v41 = vand.u32 127, %v72_v23  ;;  %s243_s18 = sshll.u32 %s394_s0, 4  ;;  %s244_s18 = int_to_ptr.vmem [resolvable:$true] %s243_s18 }
  0x2a   :  { %275 = vmatprep.subr.bf16.mxu0 %v392_v3  ;;  %v308_v17 = vld [vmem:[#allocation7 + $0x30] sm:$0xff]   ;;  %v309_v18 = vld [vmem:[#allocation7 + $0x38] sm:$0xff]   ;;  %s358_s19 = scalar_lea.vmem %s244_s18, 256  ;;  %p363_p3 = scmp.lt.s32.totalorder %s244_s18, %s244_s18 }
  0x2b   :  { %v74_v27 = vsub.s32 0, %v73_v26  ;;  %v71_v28 = vld [vmem:[%s491_s2] sm:$0x7]  ;;  %v80_v32 = vsub.s32 1, %v73_v26  ;;  %v198_v42 = vadd.s32 8, %v73_v26  ;;  %p359_p2 = scmp.ne.s32.totalorder %s244_s18, %s358_s19  ;;  %p364_p4 = scmp.lt.s32.totalorder %s358_s19, %s358_s19 }
  0x2c   :  { %50 = vadd.xlane.f32.xlu0 %v449_v1  ;;  %v204_v43 = vmul.u32 2654435761, %v73_v26  ;;  %v206_v44 = vmul.u32 2246822519, %v203_v41 }
  0x2d   :  { %276 = vmatpush3.bf16.msra.mxu0 %v303_v12  ;;  %v75_v31 = vrot.slane %v71_v28, %v74_v27  ;;  %v81_v36 = vrot.slane %v71_v28, %v80_v32  ;;  %v205_v45 = vmul.u32 2654435761, %v198_v42  ;;  %p365_p5 = por %p364_p4, %p363_p3 }
  0x2e   :  { %277 = vmatprep.subr.bf16.mxu0 %v392_v3  ;;  %v207_v46 = vxor.u32 %v206_v44, %v204_v43 }
  0x2f   :  { %v208_v48 = vxor.u32 %v206_v44, %v205_v45  ;;  %p366_p6 = pnand %p365_p5, %p359_p2 }
  0x30   :  { %v210_v49 = vxor.u32 %v209_v47, %v207_v46 }
  0x31   :  { %278 = vmatpush3.bf16.msra.mxu0 %v304_v13  ;;  %v211_v50 = vxor.u32 %v209_v47, %v208_v48 }
  0x32   :  { %279 = vmatprep.subr.bf16.mxu0 %v392_v3  ;;  %v212_v51 = vshrl.u32 %v210_v49, 16 }
  0x33   :  { %v213_v52 = vshrl.u32 %v211_v50, 16 }
  0x34   :  { %v214_v53 = vxor.u32 %v212_v51, %v210_v49 }
  0x35   :  { %280 = vmatpush3.bf16.msra.mxu0 %v305_v14  ;;  %v215_v54 = vxor.u32 %v213_v52, %v211_v50 }
  0x36   :  { %281 = vmatprep.subr.bf16.mxu0 %v392_v3  ;;  %v216_v55 = vmul.u32 2146121005, %v214_v53 }
  0x37   :  { %v217_v56 = vmul.u32 2146121005, %v215_v54 }
  0x38   :  { %v218_v57 = vshrl.u32 %v216_v55, 15 }
  0x39   :  { %282 = vmatpush3.bf16.msra.mxu0 %v306_v15  ;;  %v219_v58 = vshrl.u32 %v217_v56, 15 }
  0x3a   :  { %283 = vmatprep.subr.bf16.mxu0 %v392_v3  ;;  %v220_v59 = vxor.u32 %v218_v57, %v216_v55 }
  0x3b   :  { %v221_v60 = vxor.u32 %v219_v58, %v217_v56 }
  0x3c   :  { %v222_v61 = vmul.u32 2221713035, %v220_v59 }
  0x3d   :  { %284 = vmatpush3.bf16.msra.mxu0 %v307_v16  ;;  %v223_v62 = vmul.u32 2221713035, %v221_v60 }
  0x3e   :  { %285 = vmatprep.subr.bf16.mxu0 %v392_v3  ;;  %v224_v63 = vshrl.u32 %v222_v61, 16 }
  0x3f   :  { %v225_v2 = vshrl.u32 %v223_v62, 16 }
  0x41   :  { %286 = vmatpush3.bf16.msra.mxu0 %v308_v17 }
  0x42   :  { %287 = vmatprep.subr.bf16.mxu0 %v392_v3 }
  0x45   :  { %288 = vmatpush3.bf16.msra.mxu0 %v309_v18 }
  0xb5   :  { %v49_v4 = vpop.xlane.xlu0 %48 }
  0xb6   :  { %v53_v5 = vmul.f32 0.0078125, %v49_v4  ;;  %v103_v4 = vsub.s32 2, %v73_v26 }
  0xb8   :  { %v55_v6 = vsub.f32 %v447_v0, %v53_v5  ;;  %v226_v5 = vxor.u32 %v224_v63, %v222_v61 }
  0xb9   :  { %v51_v7 = vpop.xlane.xlu0 %50 }
  0xba   :  { %v54_v8 = vmul.f32 0.0078125, %v51_v7  ;;  %v57_v9 = vmul.f32 %v55_v6, %v55_v6  ;;  %v104_v7 = vrot.slane %v71_v28, %v103_v4  ;;  %vm228_vm1 = vcmp.ge.u32.totalorder %v226_v5, 429496730 }
  0xbc   :  { %v56_v10 = vsub.f32 %v449_v1, %v54_v8  ;;  %59 = vadd.xlane.f32.xlu1 %v57_v9  ;;  %v230_v9 = vsel %vm228_vm1, 1.1111112, %v392_v3 }
  0xbe   :  { %v58_v11 = vmul.f32 %v56_v10, %v56_v10 }
  0xc0   :  { %61 = vadd.xlane.f32.xlu1 %v58_v11 }
 0x149   :  { %v60_v19 = vpop.xlane.xlu1 %59 }
 0x14a   :  { %v63_v20 = vmul.f32 0.0078125, %v60_v19 }
 0x14c   :  { %v65_v21 = vadd.f32 1e-05, %v63_v20 }
 0x14d   :  { %v62_v22 = vpop.xlane.xlu1 %61 }
 0x14e   :  { %310 = vrsqrt.f32 %v65_v21  ;;  %v64_v24 = vmul.f32 0.0078125, %v62_v22 }
 0x150   :  { %v66_v25 = vadd.f32 1e-05, %v64_v24 }
 0x152   :  { %312 = vrsqrt.f32 %v66_v25 }
 0x158   :  { %v311_v29 = vpop.eup %310 }
 0x159   :  { %v69_v30 = vmul.f32 %v311_v29, %v55_v6  ;;  %v227_v6 = vxor.u32 %v225_v2, %v223_v62 }
 0x15b   :  { %v76_v35 = vmul.f32 %v75_v31, %v69_v30  ;;  %vm229_vm2 = vcmp.ge.u32.totalorder %v227_v6, 429496730 }
 0x15c   :  { %v313_v33 = vpop.eup %312  ;;  %v231_v13 = vsel %vm229_vm2, 1.1111112, %v392_v3 }
 0x15d   :  { %v70_v34 = vmul.f32 %v313_v33, %v56_v10  ;;  %v82_v38 = vadd.f32 %v81_v36, %v76_v35 }
 0x15f   :  { %v77_v37 = vmul.f32 %v75_v31, %v70_v34 }
 0x161   :  { %v83_v39 = vadd.f32 %v81_v36, %v77_v37 }
 0x163   :  { %v84_v40 = vpack.c.bf16 %v83_v39, %v82_v38 }
 0x165   :  { %290 = vmatmul.mubr.bf16.vlgmr.msra.gmra.mrb[0].mxu0 %v84_v40 }
 0x238   :  { %v187_v8 = vpop.f32.mrb[0].mxu0 }
 0x239   :  { %v188_v10 = vadd.f32 %v187_v8, %v104_v7  ;;  %v291_v11 = vpop.f32.mrb[1].mxu0 }
 0x23a   :  { %v190_v12 = vpop.f32.mrb[2].mxu0 }
 0x23b   :  { %v232_v14 = vmul.f32 %v230_v9, %v188_v10  ;;  %v191_v15 = vadd.f32 %v190_v12, %v104_v7  ;;  %v292_v16 = vpop.f32.mrb[3].mxu0 }
 0x23d   :  { %v234_v17 = vadd.f32 %v232_v14, %v447_v0  ;;  %v233_v18 = vmul.f32 %v231_v13, %v191_v15 }
 0x23f   :  { %236 = vst [vmem:[#allocation9] sm:$0xff] %v234_v17  ;;  %v235_v19 = vadd.f32 %v233_v18, %v449_v1 }
 0x241   :  { %237 = vst [vmem:[#allocation9 + $0x8] sm:$0xff] %v235_v19 }
 0x242   :  { %369 = shalt.err (!%p366_p6)
}
 0x243   :  { %s370_s22 = scalar_lea.hbm %s493_s4, 256 }
 0x244   :  { %p371_p7 = scmp.ne.s32.totalorder %s493_s4, %s370_s22  ;;  %p374_p8 = scmp.lt.u32.totalorder %s370_s22, %s493_s4 }
 0x246   :  { %p376_p9 = pnand %p374_p8, %p371_p7 }
 0x248   :  { %379 = shalt.err (!%p376_p9)
}
 0x249   :  { %249 = dma.vmem_to_hbm [thread:$0]  %s244_s18, 256, %s493_s4, [#allocation6], %s387_s25, %s387_s25, %s388_s26  }
 0x24a   :  { %384 = dma.done.wait [#allocation6], 256  }
 0x24b   :  { %385 = vsyncadd [#allocation6], 4294967040 }
 0x24c   :  { %253 = vsyncpa [#allocation5], 1 }
 0x24d   :  { %254 = vsyncpa [#allocation8], 1 }
 0x24e   :  { %255 = vsyncpa [#allocation6], 1 }

</bundles_post_ra>
